<compile_context>
chip_gen: v7x
topology: tpu7x:2x2x1
jax: 0.10.0
libtpu: 0.0.40
codegen_flags: <defaults>
</compile_context>

<pallas_src>
import functools

import jax
import jax.numpy as jnp
from jax.experimental import pallas as pl
from jax.experimental.pallas import tpu as pltpu

BN_EPS = 1e-5
INV_SQRT2 = 0.7071067811865476
K_TAPS = 5  # Conv1d kernel_size


def _erf(x):
    # Abramowitz & Stegun 7.1.26 polynomial erf (|abs err| <= 1.5e-7), built
    # from ops that lower in Mosaic; matches torch's exact-GELU erf to f32.
    a1, a2, a3, a4, a5 = 0.254829592, -0.284496736, 1.421413741, -1.453152027, 1.061405429
    p = 0.3275911
    s = jnp.where(x >= 0.0, 1.0, -1.0)
    z = jnp.abs(x)
    d = 1.0 + p * z
    # EUP approximate reciprocal + one Newton-Raphson step (~f32 accurate),
    # keeping the divide off the VALU path of this VALU-heavy epilogue.
    t = pl.reciprocal(d, approx=True)
    t = t * (2.0 - d * t)
    poly = ((((a5 * t + a4) * t + a3) * t + a2) * t + a1) * t
    return s * (1.0 - poly * jnp.exp(-z * z))


def cnn1d_kernel(x_ref, w_ref, bias_ref, gamma_ref, beta_ref, out_ref, lhs_ref):
    # x_ref:    (B, T_out+2, 2*C_in) bf16 resident -- padded input with even/odd
    #           time phases interleaved on lanes (row r = padded rows [2r, 2r+1]).
    # w_ref:    (5*C_in, C_out) bf16 resident -- conv weights, tap-major rows.
    # bias_ref: (1, C_out) f32 resident.
    # gamma_ref / beta_ref: (T_out, 1) f32 resident BN affine params.
    # out_ref:  (B, block_t, C_out) f32 tile of the (B, T_out, n_feats) output.
    # lhs_ref:  (B, block_t, 5*C_in) bf16 VMEM scratch -- per-step im2col LHS.
    B, tT, C_out = out_ref.shape
    C2 = x_ref.shape[2]          # 2 * C_in
    C_in = C2 // 2
    KC = w_ref.shape[0]          # 5 * C_in
    M = B * tT

    t0 = pl.multiple_of(pl.program_id(0) * tT, tT)

    # One aligned halo load per step; per-tap offsets become static sub-slices.
    h = x_ref[:, pl.ds(t0, tT + 2), :]                      # (B, tT+2, 2*C_in)

    # im2col assembly: output row t uses padded rows 2t..2t+4, i.e. interleaved
    # rows t, t+1 (both halves) and the even half of row t+2.
    lhs_ref[:, :, 0:C2]      = h[:, 0:tT, :]                # taps 0, 1
    lhs_ref[:, :, C2:2 * C2] = h[:, 1:tT + 1, :]            # taps 2, 3
    lhs_ref[:, :, 2 * C2:KC] = h[:, 2:tT + 2, 0:C_in]       # tap 4

    # Single fused MXU matmul over the K = 5*C_in contraction, f32 accumulation.
    y = jnp.dot(lhs_ref[...].reshape(M, KC), w_ref[...],
                preferred_element_type=jnp.float32)
    y = y.reshape(B, tT, C_out) + bias_ref[...]

    # BatchNorm1d applied after transpose(1, 2): channel dim == T_out; stats
    # reduce over (B, C_out) only, so per-tile statistics are exact.
    # Training-mode batch statistics, biased variance (PyTorch semantics).
    # TODO(synk): running_mean/running_var buffer updates (training-time module
    # state) are not modeled; they do not affect the forward output.
    mean = jnp.mean(y, axis=(0, 2), keepdims=True)                   # (1, tT, 1)
    var = jnp.mean(jnp.square(y - mean), axis=(0, 2), keepdims=True)
    g = gamma_ref[pl.ds(t0, tT), :]                                  # (tT, 1)
    b = beta_ref[pl.ds(t0, tT), :]
    scale = g[None, :, :] * jax.lax.rsqrt(var + BN_EPS)
    shift = b[None, :, :] - mean * scale
    y = y * scale + shift

    # Exact (erf-based) GELU, matching F.gelu default.
    out_ref[...] = 0.5 * y * (1.0 + _erf(y * INV_SQRT2))


def _default_block_t(B, T_out, C_out):
    """Pick the BN-channel tile: >= 2 grid steps whenever possible (v7x
    megacore), M = B*block_t >= ~256 MXU rows and >= ~0.5 MB output tiles."""
    cands = [d for d in range(8, T_out, 8) if T_out % d == 0]
    if not cands:
        return T_out                     # no multiple-of-8 split -> single tile
    def big_enough(d):
        return B * d >= 256 and B * d * C_out * 4 >= (512 << 10)
    good = [d for d in cands if big_enough(d)]
    return min(good) if good else max(cands)


def _vmem_limit_bytes(needed):
    """Size the scoped-VMEM limit from the actual footprint + physical VMEM."""
    try:
        cap = int(getattr(pltpu.get_tpu_info(), "vmem_capacity_bytes", 64 << 20))
    except Exception:
        cap = 64 << 20                   # conservative (v7x-sized) fallback
    want = 2 * needed + (8 << 20)        # headroom for spills / internal scratch
    return int(max(16 << 20, min(want, (cap * 3) // 4)))


@functools.partial(jax.jit, static_argnames=("block_t", "single_buffer"))
def cnn1d_forward(x, conv_w, conv_b, gamma, beta, *, block_t=None, single_buffer=True):
    """x: (B, 1, n_feats, T) -> (B, T_out, n_feats), matching CNN1D.forward."""
    x = jnp.squeeze(x, axis=1)                            # (B, C_in, T)
    B, C_in, T = x.shape
    C_out, C_in2, K = conv_w.shape
    assert C_in2 == C_in and K == K_TAPS
    stride, pad = 2, K // 2
    T_out = (T + 2 * pad - K) // stride + 1
    assert gamma.shape[0] == T_out, "BatchNorm1d(n_feats) requires T_out == n_feats"
    # NOTE: for lane-dense output stores, n_feats (= C_out) should be a multiple
    # of 128 in production configs; smaller toy values still run (masked vst).

    # Glue (~2 HBM passes of input size; the reshape is free): cast to bf16,
    # go time-major, pad time to 2*(T_out+2), interleave even/odd rows on lanes.
    T_half = T_out + 2
    x_tm = jnp.transpose(x.astype(jnp.bfloat16), (0, 2, 1))           # (B, T, C_in)
    x_pad = jnp.pad(x_tm, ((0, 0), (pad, 2 * T_half - pad - T), (0, 0)))
    x_il = x_pad.reshape(B, T_half, 2 * C_in)           # row r = padded rows [2r, 2r+1]

    # Conv weights as a (K*C_in, C_out) bf16 matrix, tap-major / c_in-minor rows.
    w_mat = jnp.transpose(conv_w, (2, 1, 0)).reshape(K * C_in, C_out).astype(jnp.bfloat16)
    bias_row = conv_b.reshape(1, C_out).astype(jnp.float32)
    gamma_col = gamma.reshape(T_out, 1).astype(jnp.float32)
    beta_col = beta.reshape(T_out, 1).astype(jnp.float32)

    # Tile the BN channel axis (T_out); tiles are exactly independent, so the
    # grid axis is "parallel" (shardable across v7x's two TensorCores).
    if block_t is None or T_out % block_t != 0 or (block_t % 8 != 0 and block_t != T_out):
        block_t = _default_block_t(B, T_out, C_out)
    n_tiles = T_out // block_t

    # Constant-index resident blocks: single-buffer so they are not
    # double-allocated in VMEM.
    resident = dict(pipeline_mode=pl.Buffered(1)) if single_buffer else {}
    bufs = 1 if single_buffer else 2
    resident_bytes = bufs * (x_il.size * 2 + w_mat.size * 2
                             + (bias_row.size + gamma_col.size + beta_col.size) * 4)
    working_bytes = B * block_t * (K * C_in * 2 + 2 * C_out * 4)   # lhs scratch + 2x out tile

    grid_spec = pltpu.PrefetchScalarGridSpec(
        num_scalar_prefetch=0,
        grid=(n_tiles,),
        in_specs=[
            pl.BlockSpec((B, T_half, 2 * C_in), lambda i: (0, 0, 0), **resident),  # resident input
            pl.BlockSpec((K * C_in, C_out), lambda i: (0, 0), **resident),         # resident weights
            pl.BlockSpec((1, C_out), lambda i: (0, 0), **resident),                # resident bias
            pl.BlockSpec((T_out, 1), lambda i: (0, 0), **resident),                # resident gamma
            pl.BlockSpec((T_out, 1), lambda i: (0, 0), **resident),                # resident beta
        ],
        out_specs=pl.BlockSpec((B, block_t, C_out), lambda i: (0, i, 0)),
        scratch_shapes=[pltpu.VMEM((B, block_t, K * C_in), jnp.bfloat16)],
    )
    return pl.pallas_call(
        cnn1d_kernel,
        out_shape=jax.ShapeDtypeStruct((B, T_out, C_out), jnp.float32),
        grid_spec=grid_spec,
        compiler_params=pltpu.CompilerParams(
            dimension_semantics=("parallel",),
            vmem_limit_bytes=_vmem_limit_bytes(resident_bytes + working_bytes),
        ),
    )(x_il, w_mat, bias_row, gamma_col, beta_col)


def reference_forward(x, conv_w, conv_b, gamma, beta):
    """Pure-JAX reference mirroring the PyTorch forward (training mode, f32)."""
    x = jnp.squeeze(x, axis=1)
    y = jax.lax.conv_general_dilated(
        x, conv_w, window_strides=(2,), padding=[(2, 2)],
        dimension_numbers=("NCH", "OIH", "NCH"),
        precision=jax.lax.Precision.HIGHEST,
    ) + conv_b[None, :, None]
    y = y.transpose(0, 2, 1)                              # (B, T_out, C)
    mean = y.mean(axis=(0, 2), keepdims=True)
    var = ((y - mean) ** 2).mean(axis=(0, 2), keepdims=True)
    y = (y - mean) / jnp.sqrt(var + BN_EPS) * gamma[None, :, None] + beta[None, :, None]
    return 0.5 * y * (1.0 + jax.scipy.special.erf(y * INV_SQRT2))


if __name__ == "__main__":
    B, n_feats, T, K = 2, 16, 32, 5
    T_out = (T + 2 * (K // 2) - K) // 2 + 1
    assert T_out == n_feats  # module is only well-defined when these match

    key = jax.random.PRNGKey(0)
    kx, kw, kb, kg, kbt = jax.random.split(key, 5)
    x = jax.random.normal(kx, (B, 1, n_feats, T), jnp.float32)
    conv_w = 0.1 * jax.random.normal(kw, (n_feats, n_feats, K), jnp.float32)
    conv_b = 0.1 * jax.random.normal(kb, (n_feats,), jnp.float32)
    gamma = 1.0 + 0.1 * jax.random.normal(kg, (n_feats,), jnp.float32)
    beta = 0.1 * jax.random.normal(kbt, (n_feats,), jnp.float32)

    try:
        # Default path: 2-step "parallel" grid (block_t heuristic -> 8 here),
        # single-buffered resident blocks.
        out = jax.block_until_ready(cnn1d_forward(x, conv_w, conv_b, gamma, beta))
    except Exception:
        # Backends that reject single-buffered (pl.Buffered(1)) resident blocks
        # fall back to the default double-buffered pipeline.
        out = jax.block_until_ready(
            cnn1d_forward(x, conv_w, conv_b, gamma, beta, single_buffer=False))
    ref = reference_forward(x, conv_w, conv_b, gamma, beta)

    assert out.shape == (B, T_out, n_feats)
    assert bool(jnp.all(jnp.isfinite(out)))
    # Kernel matmul uses bf16 operands with f32 accumulation; the reference
    # keeps full-f32 (HIGHEST) conv, so compare at a bf16-matmul tolerance.
    err = float(jnp.max(jnp.abs(out - ref)))
    assert err < 3e-2, f"max abs error {err}"
    print("KERNEL_OK")
</pallas_src>

<mosaic_0001>
module attributes {stable_mosaic.version = 11 : i64} {
  func.func @cnn1d_kernel(%arg0: i32, %arg1: memref<2x18x32xbf16, #tpu.memory_space<vmem>>, %arg2: memref<80x16xbf16, #tpu.memory_space<vmem>>, %arg3: memref<1x16xf32, #tpu.memory_space<vmem>>, %arg4: memref<16x1xf32, #tpu.memory_space<vmem>>, %arg5: memref<16x1xf32, #tpu.memory_space<vmem>>, %arg6: memref<2x8x16xf32, #tpu.memory_space<vmem>>, %arg7: memref<2x8x80xbf16, #tpu.memory_space<vmem>>) attributes {dimension_semantics = [#tpu.dimension_semantics<parallel>], iteration_bounds = array<i64: 2>, scalar_prefetch = 0 : i64, scratch_operands = 1 : i64, tpu.core_type = #tpu.core_type<tc>, window_params = [{pipeline_mode = #tpu.pipeline_mode<synchronous>, transform_indices = @transform_0, window_bounds = array<i64: 2, 18, 32>}, {pipeline_mode = #tpu.pipeline_mode<synchronous>, transform_indices = @transform_1, window_bounds = array<i64: 80, 16>}, {pipeline_mode = #tpu.pipeline_mode<synchronous>, transform_indices = @transform_2, window_bounds = array<i64: 1, 16>}, {pipeline_mode = #tpu.pipeline_mode<synchronous>, transform_indices = @transform_3, window_bounds = array<i64: 16, 1>}, {pipeline_mode = #tpu.pipeline_mode<synchronous>, transform_indices = @transform_4, window_bounds = array<i64: 16, 1>}, {transform_indices = @transform_5, window_bounds = array<i64: 2, 8, 16>}]} {
    %c8_i32 = arith.constant 8 : i32
    %0 = arith.muli %arg0, %c8_i32 : i32
    %1 = tpu.assume_multiple %0, 8 : i32
    %c0 = arith.constant 0 : index
    %2 = arith.index_cast %1 : i32 to index
    %c0_0 = arith.constant 0 : index
    %3 = vector.load %arg1[%c0, %2, %c0_0] : memref<2x18x32xbf16, #tpu.memory_space<vmem>>, vector<2x10x32xbf16>
    %4 = vector.extract_strided_slice %3 {offsets = [0, 0, 0], sizes = [2, 8, 32], strides = [1, 1, 1]} : vector<2x10x32xbf16> to vector<2x8x32xbf16>
    %c0_1 = arith.constant 0 : index
    %c0_2 = arith.constant 0 : index
    %c0_3 = arith.constant 0 : index
    %5 = vector.load %arg7[%c0_1, %c0_2, %c0_3] : memref<2x8x80xbf16, #tpu.memory_space<vmem>>, vector<2x8x32xbf16>
    tpu.vector_store %arg7[%c0_1, %c0_2, %c0_3], %4 {strides = array<i32>} : memref<2x8x80xbf16, #tpu.memory_space<vmem>>, vector<2x8x32xbf16>,
    %6 = vector.extract_strided_slice %3 {offsets = [0, 1, 0], sizes = [2, 8, 32], strides = [1, 1, 1]} : vector<2x10x32xbf16> to vector<2x8x32xbf16>
    %c0_4 = arith.constant 0 : index
    %c0_5 = arith.constant 0 : index
    %c32 = arith.constant 32 : index
    %7 = vector.load %arg7[%c0_4, %c0_5, %c32] : memref<2x8x80xbf16, #tpu.memory_space<vmem>>, vector<2x8x32xbf16>
    tpu.vector_store %arg7[%c0_4, %c0_5, %c32], %6 {strides = array<i32>} : memref<2x8x80xbf16, #tpu.memory_space<vmem>>, vector<2x8x32xbf16>,
    %8 = vector.extract_strided_slice %3 {offsets = [0, 2, 0], sizes = [2, 8, 16], strides = [1, 1, 1]} : vector<2x10x32xbf16> to vector<2x8x16xbf16>
    %c0_6 = arith.constant 0 : index
    %c0_7 = arith.constant 0 : index
    %c64 = arith.constant 64 : index
    %9 = vector.load %arg7[%c0_6, %c0_7, %c64] : memref<2x8x80xbf16, #tpu.memory_space<vmem>>, vector<2x8x16xbf16>
    tpu.vector_store %arg7[%c0_6, %c0_7, %c64], %8 {strides = array<i32>} : memref<2x8x80xbf16, #tpu.memory_space<vmem>>, vector<2x8x16xbf16>,
    %c0_8 = arith.constant 0 : index
    %c0_9 = arith.constant 0 : index
    %c0_10 = arith.constant 0 : index
    %10 = vector.load %arg7[%c0_8, %c0_9, %c0_10] : memref<2x8x80xbf16, #tpu.memory_space<vmem>>, vector<2x8x80xbf16>
    %11 = vector.shape_cast %10 : vector<2x8x80xbf16> to vector<16x80xbf16>
    %c0_11 = arith.constant 0 : index
    %c0_12 = arith.constant 0 : index
    %12 = vector.load %arg2[%c0_11, %c0_12] : memref<80x16xbf16, #tpu.memory_space<vmem>>, vector<80x16xbf16>
    %cst = arith.constant dense<0.000000e+00> : vector<16x16xf32>
    %13 = tpu.matmul %11, %12, %cst {dimension_numbers = #tpu.dot_dimension_numbers<[1], [0], [0], [1], [0, 0, 1, 1], [], []>} : vector<16x80xbf16>, vector<80x16xbf16>, vector<16x16xf32> -> vector<16x16xf32>
    %14 = vector.shape_cast %13 : vector<16x16xf32> to vector<2x8x16xf32>
    %c0_13 = arith.constant 0 : index
    %c0_14 = arith.constant 0 : index
    %15 = vector.load %arg3[%c0_13, %c0_14] : memref<1x16xf32, #tpu.memory_space<vmem>>, vector<1x16xf32>
    %16 = vector.shape_cast %15 : vector<1x16xf32> to vector<1x1x16xf32>
    %17 = vector.broadcast %16 : vector<1x1x16xf32> to vector<2x8x16xf32>
    %18 = arith.addf %14, %17 : vector<2x8x16xf32>
    %cst_15 = arith.constant dense<0.000000e+00> : vector<8xf32>
    %19 = vector.multi_reduction <add>, %18, %cst_15 [0, 2] : vector<2x8x16xf32> to vector<8xf32>
    %20 = vector.shape_cast %19 : vector<8xf32> to vector<1x8x1xf32>
    %cst_16 = arith.constant 3.200000e+01 : f32
    %21 = vector.broadcast %cst_16 : f32 to vector<1x8x1xf32>
    %22 = arith.divf %20, %21 : vector<1x8x1xf32>
    %23 = vector.broadcast %22 : vector<1x8x1xf32> to vector<2x8x16xf32>
    %24 = arith.subf %18, %23 : vector<2x8x16xf32>
    %25 = arith.mulf %24, %24 : vector<2x8x16xf32>
    %cst_17 = arith.constant dense<0.000000e+00> : vector<8xf32>
    %26 = vector.multi_reduction <add>, %25, %cst_17 [0, 2] : vector<2x8x16xf32> to vector<8xf32>
    %27 = vector.shape_cast %26 : vector<8xf32> to vector<1x8x1xf32>
    %cst_18 = arith.constant 3.200000e+01 : f32
    %28 = vector.broadcast %cst_18 : f32 to vector<1x8x1xf32>
    %29 = arith.divf %27, %28 : vector<1x8x1xf32>
    %30 = arith.index_cast %1 : i32 to index
    %c0_19 = arith.constant 0 : index
    %31 = vector.load %arg4[%30, %c0_19] : memref<16x1xf32, #tpu.memory_space<vmem>>, vector<8x1xf32>
    %32 = arith.index_cast %1 : i32 to index
    %c0_20 = arith.constant 0 : index
    %33 = vector.load %arg5[%32, %c0_20] : memref<16x1xf32, #tpu.memory_space<vmem>>, vector<8x1xf32>
    %34 = vector.shape_cast %31 : vector<8x1xf32> to vector<1x8x1xf32>
    %cst_21 = arith.constant 9.99999974E-6 : f32
    %35 = vector.broadcast %cst_21 : f32 to vector<1x8x1xf32>
    %36 = arith.addf %29, %35 : vector<1x8x1xf32>
    %37 = math.rsqrt %36 : vector<1x8x1xf32>
    %38 = arith.mulf %34, %37 : vector<1x8x1xf32>
    %39 = vector.shape_cast %33 : vector<8x1xf32> to vector<1x8x1xf32>
    %40 = arith.mulf %22, %38 : vector<1x8x1xf32>
    %41 = arith.subf %39, %40 : vector<1x8x1xf32>
    %42 = vector.broadcast %38 : vector<1x8x1xf32> to vector<2x8x16xf32>
    %43 = arith.mulf %18, %42 : vector<2x8x16xf32>
    %44 = vector.broadcast %41 : vector<1x8x1xf32> to vector<2x8x16xf32>
    %45 = arith.addf %43, %44 : vector<2x8x16xf32>
    %cst_22 = arith.constant 5.000000e-01 : f32
    %46 = vector.broadcast %cst_22 : f32 to vector<2x8x16xf32>
    %47 = arith.mulf %46, %45 : vector<2x8x16xf32>
    %cst_23 = arith.constant 0.707106769 : f32
    %48 = vector.broadcast %cst_23 : f32 to vector<2x8x16xf32>
    %49 = arith.mulf %45, %48 : vector<2x8x16xf32>
    %cst_24 = arith.constant 0.000000e+00 : f32
    %50 = vector.broadcast %cst_24 : f32 to vector<2x8x16xf32>
    %51 = arith.cmpf oge, %49, %50 : vector<2x8x16xf32>
    %cst_25 = arith.constant 1.000000e+00 : f32
    %cst_26 = arith.constant -1.000000e+00 : f32
    %52 = vector.broadcast %cst_25 : f32 to vector<2x8x16xf32>
    %53 = vector.broadcast %cst_26 : f32 to vector<2x8x16xf32>
    %54 = arith.select %51, %52, %53 : vector<2x8x16xi1>, vector<2x8x16xf32>
    %55 = math.absf %49 : vector<2x8x16xf32>
    %cst_27 = arith.constant 0.327591091 : f32
    %56 = vector.broadcast %cst_27 : f32 to vector<2x8x16xf32>
    %57 = arith.mulf %56, %55 : vector<2x8x16xf32>
    %cst_28 = arith.constant 1.000000e+00 : f32
    %58 = vector.broadcast %cst_28 : f32 to vector<2x8x16xf32>
    %59 = arith.addf %58, %57 : vector<2x8x16xf32>
    %60 = tpu.reciprocal %59 {approx = true} : vector<2x8x16xf32> -> vector<2x8x16xf32>
    %61 = arith.mulf %59, %60 : vector<2x8x16xf32>
    %cst_29 = arith.constant 2.000000e+00 : f32
    %62 = vector.broadcast %cst_29 : f32 to vector<2x8x16xf32>
    %63 = arith.subf %62, %61 : vector<2x8x16xf32>
    %64 = arith.mulf %60, %63 : vector<2x8x16xf32>
    %cst_30 = arith.constant 1.06140542 : f32
    %65 = vector.broadcast %cst_30 : f32 to vector<2x8x16xf32>
    %66 = arith.mulf %65, %64 : vector<2x8x16xf32>
    %cst_31 = arith.constant -1.45315206 : f32
    %67 = vector.broadcast %cst_31 : f32 to vector<2x8x16xf32>
    %68 = arith.addf %66, %67 : vector<2x8x16xf32>
    %69 = arith.mulf %68, %64 : vector<2x8x16xf32>
    %cst_32 = arith.constant 1.42141378 : f32
    %70 = vector.broadcast %cst_32 : f32 to vector<2x8x16xf32>
    %71 = arith.addf %69, %70 : vector<2x8x16xf32>
    %72 = arith.mulf %71, %64 : vector<2x8x16xf32>
    %cst_33 = arith.constant -0.284496725 : f32
    %73 = vector.broadcast %cst_33 : f32 to vector<2x8x16xf32>
    %74 = arith.addf %72, %73 : vector<2x8x16xf32>
    %75 = arith.mulf %74, %64 : vector<2x8x16xf32>
    %cst_34 = arith.constant 0.254829586 : f32
    %76 = vector.broadcast %cst_34 : f32 to vector<2x8x16xf32>
    %77 = arith.addf %75, %76 : vector<2x8x16xf32>
    %78 = arith.mulf %77, %64 : vector<2x8x16xf32>
    %cst_35 = arith.constant 0.000000e+00 : f32
    %79 = vector.broadcast %cst_35 : f32 to vector<2x8x16xf32>
    %80 = arith.subf %79, %55 : vector<2x8x16xf32>
    %81 = arith.mulf %80, %55 : vector<2x8x16xf32>
    %82 = math.exp %81 : vector<2x8x16xf32>
    %83 = arith.mulf %78, %82 : vector<2x8x16xf32>
    %cst_36 = arith.constant 1.000000e+00 : f32
    %84 = vector.broadcast %cst_36 : f32 to vector<2x8x16xf32>
    %85 = arith.subf %84, %83 : vector<2x8x16xf32>
    %86 = arith.mulf %54, %85 : vector<2x8x16xf32>
    %cst_37 = arith.constant 1.000000e+00 : f32
    %87 = vector.broadcast %cst_37 : f32 to vector<2x8x16xf32>
    %88 = arith.addf %87, %86 : vector<2x8x16xf32>
    %89 = arith.mulf %47, %88 : vector<2x8x16xf32>
    %c0_38 = arith.constant 0 : index
    %c0_39 = arith.constant 0 : index
    %c0_40 = arith.constant 0 : index
    %90 = vector.load %arg6[%c0_38, %c0_39, %c0_40] : memref<2x8x16xf32, #tpu.memory_space<vmem>>, vector<2x8x16xf32>
    tpu.vector_store %arg6[%c0_38, %c0_39, %c0_40], %89 {strides = array<i32>} : memref<2x8x16xf32, #tpu.memory_space<vmem>>, vector<2x8x16xf32>,
    return
  }
  func.func @transform_0(%arg0: i32) -> (i32, i32, i32) {
    %c0_i32 = arith.constant 0 : i32
    %c0_i32_0 = arith.constant 0 : i32
    %c0_i32_1 = arith.constant 0 : i32
    %c0_i32_2 = arith.constant 0 : i32
    return %c0_i32, %c0_i32_0, %c0_i32_1 : i32, i32, i32
  }
  func.func @transform_1(%arg0: i32) -> (i32, i32) {
    %c0_i32 = arith.constant 0 : i32
    %c0_i32_0 = arith.constant 0 : i32
    %c0_i32_1 = arith.constant 0 : i32
    return %c0_i32, %c0_i32_0 : i32, i32
  }
  func.func @transform_2(%arg0: i32) -> (i32, i32) {
    %c0_i32 = arith.constant 0 : i32
    %c0_i32_0 = arith.constant 0 : i32
    %c0_i32_1 = arith.constant 0 : i32
    return %c0_i32, %c0_i32_0 : i32, i32
  }
  func.func @transform_3(%arg0: i32) -> (i32, i32) {
    %c0_i32 = arith.constant 0 : i32
    %c0_i32_0 = arith.constant 0 : i32
    %c0_i32_1 = arith.constant 0 : i32
    return %c0_i32, %c0_i32_0 : i32, i32
  }
  func.func @transform_4(%arg0: i32) -> (i32, i32) {
    %c0_i32 = arith.constant 0 : i32
    %c0_i32_0 = arith.constant 0 : i32
    %c0_i32_1 = arith.constant 0 : i32
    return %c0_i32, %c0_i32_0 : i32, i32
  }
  func.func @transform_5(%arg0: i32) -> (i32, i32, i32) {
    %c0_i32 = arith.constant 0 : i32
    %c0_i32_0 = arith.constant 0 : i32
    %c0_i32_1 = arith.constant 0 : i32
    return %c0_i32, %arg0, %c0_i32_0 : i32, i32, i32
  }
}

module attributes {stable_mosaic.version = 11 : i64} {
  func.func @cnn1d_kernel(%arg0: i32, %arg1: memref<2x18x32xbf16, #tpu.memory_space<vmem>>, %arg2: memref<80x16xbf16, #tpu.memory_space<vmem>>, %arg3: memref<1x16xf32, #tpu.memory_space<vmem>>, %arg4: memref<16x1xf32, #tpu.memory_space<vmem>>, %arg5: memref<16x1xf32, #tpu.memory_space<vmem>>, %arg6: memref<2x8x16xf32, #tpu.memory_space<vmem>>, %arg7: memref<2x8x80xbf16, #tpu.memory_space<vmem>>) attributes {dimension_semantics = [#tpu.dimension_semantics<parallel>], iteration_bounds = array<i64: 2>, scalar_prefetch = 0 : i64, scratch_operands = 1 : i64, tpu.core_type = #tpu.core_type<tc>, window_params = [{pipeline_mode = #tpu.pipeline_mode<synchronous>, transform_indices = @transform_0, window_bounds = array<i64: 2, 18, 32>}, {pipeline_mode = #tpu.pipeline_mode<synchronous>, transform_indices = @transform_1, window_bounds = array<i64: 80, 16>}, {pipeline_mode = #tpu.pipeline_mode<synchronous>, transform_indices = @transform_2, window_bounds = array<i64: 1, 16>}, {pipeline_mode = #tpu.pipeline_mode<synchronous>, transform_indices = @transform_3, window_bounds = array<i64: 16, 1>}, {pipeline_mode = #tpu.pipeline_mode<synchronous>, transform_indices = @transform_4, window_bounds = array<i64: 16, 1>}, {transform_indices = @transform_5, window_bounds = array<i64: 2, 8, 16>}]} {
    %c8_i32 = arith.constant 8 : i32
    %0 = arith.muli %arg0, %c8_i32 : i32
    %1 = tpu.assume_multiple %0, 8 : i32
    %c0 = arith.constant 0 : index
    %2 = arith.index_cast %1 : i32 to index
    %c0_0 = arith.constant 0 : index
    %3 = vector.load %arg1[%c0, %2, %c0_0] : memref<2x18x32xbf16, #tpu.memory_space<vmem>>, vector<2x10x32xbf16>
    %4 = vector.extract_strided_slice %3 {offsets = [0, 0, 0], sizes = [2, 8, 32], strides = [1, 1, 1]} : vector<2x10x32xbf16> to vector<2x8x32xbf16>
    %c0_1 = arith.constant 0 : index
    %c0_2 = arith.constant 0 : index
    %c0_3 = arith.constant 0 : index
    %5 = vector.load %arg7[%c0_1, %c0_2, %c0_3] : memref<2x8x80xbf16, #tpu.memory_space<vmem>>, vector<2x8x32xbf16>
    tpu.vector_store %arg7[%c0_1, %c0_2, %c0_3], %4 {strides = array<i32>} : memref<2x8x80xbf16, #tpu.memory_space<vmem>>, vector<2x8x32xbf16>,
    %6 = vector.extract_strided_slice %3 {offsets = [0, 1, 0], sizes = [2, 8, 32], strides = [1, 1, 1]} : vector<2x10x32xbf16> to vector<2x8x32xbf16>
    %c0_4 = arith.constant 0 : index
    %c0_5 = arith.constant 0 : index
    %c32 = arith.constant 32 : index
    %7 = vector.load %arg7[%c0_4, %c0_5, %c32] : memref<2x8x80xbf16, #tpu.memory_space<vmem>>, vector<2x8x32xbf16>
    tpu.vector_store %arg7[%c0_4, %c0_5, %c32], %6 {strides = array<i32>} : memref<2x8x80xbf16, #tpu.memory_space<vmem>>, vector<2x8x32xbf16>,
    %8 = vector.extract_strided_slice %3 {offsets = [0, 2, 0], sizes = [2, 8, 16], strides = [1, 1, 1]} : vector<2x10x32xbf16> to vector<2x8x16xbf16>
    %c0_6 = arith.constant 0 : index
    %c0_7 = arith.constant 0 : index
    %c64 = arith.constant 64 : index
    %9 = vector.load %arg7[%c0_6, %c0_7, %c64] : memref<2x8x80xbf16, #tpu.memory_space<vmem>>, vector<2x8x16xbf16>
    tpu.vector_store %arg7[%c0_6, %c0_7, %c64], %8 {strides = array<i32>} : memref<2x8x80xbf16, #tpu.memory_space<vmem>>, vector<2x8x16xbf16>,
    %c0_8 = arith.constant 0 : index
    %c0_9 = arith.constant 0 : index
    %c0_10 = arith.constant 0 : index
    %10 = vector.load %arg7[%c0_8, %c0_9, %c0_10] : memref<2x8x80xbf16, #tpu.memory_space<vmem>>, vector<2x8x80xbf16>
    %11 = vector.shape_cast %10 : vector<2x8x80xbf16> to vector<16x80xbf16>
    %c0_11 = arith.constant 0 : index
    %c0_12 = arith.constant 0 : index
    %12 = vector.load %arg2[%c0_11, %c0_12] : memref<80x16xbf16, #tpu.memory_space<vmem>>, vector<80x16xbf16>
    %cst = arith.constant dense<0.000000e+00> : vector<16x16xf32>
    %13 = tpu.matmul %11, %12, %cst {dimension_numbers = #tpu.dot_dimension_numbers<[1], [0], [0], [1], [0, 0, 1, 1], [], []>} : vector<16x80xbf16>, vector<80x16xbf16>, vector<16x16xf32> -> vector<16x16xf32>
    %14 = vector.shape_cast %13 : vector<16x16xf32> to vector<2x8x16xf32>
    %c0_13 = arith.constant 0 : index
    %c0_14 = arith.constant 0 : index
    %15 = vector.load %arg3[%c0_13, %c0_14] : memref<1x16xf32, #tpu.memory_space<vmem>>, vector<1x16xf32>
    %16 = vector.shape_cast %15 : vector<1x16xf32> to vector<1x1x16xf32>
    %17 = vector.broadcast %16 : vector<1x1x16xf32> to vector<2x8x16xf32>
    %18 = arith.addf %14, %17 : vector<2x8x16xf32>
    %cst_15 = arith.constant dense<0.000000e+00> : vector<8xf32>
    %19 = vector.multi_reduction <add>, %18, %cst_15 [0, 2] : vector<2x8x16xf32> to vector<8xf32>
    %20 = vector.shape_cast %19 : vector<8xf32> to vector<1x8x1xf32>
    %cst_16 = arith.constant 3.200000e+01 : f32
    %21 = vector.broadcast %cst_16 : f32 to vector<1x8x1xf32>
    %22 = arith.divf %20, %21 : vector<1x8x1xf32>
    %23 = vector.broadcast %22 : vector<1x8x1xf32> to vector<2x8x16xf32>
    %24 = arith.subf %18, %23 : vector<2x8x16xf32>
    %25 = arith.mulf %24, %24 : vector<2x8x16xf32>
    %cst_17 = arith.constant dense<0.000000e+00> : vector<8xf32>
    %26 = vector.multi_reduction <add>, %25, %cst_17 [0, 2] : vector<2x8x16xf32> to vector<8xf32>
    %27 = vector.shape_cast %26 : vector<8xf32> to vector<1x8x1xf32>
    %cst_18 = arith.constant 3.200000e+01 : f32
    %28 = vector.broadcast %cst_18 : f32 to vector<1x8x1xf32>
    %29 = arith.divf %27, %28 : vector<1x8x1xf32>
    %30 = arith.index_cast %1 : i32 to index
    %c0_19 = arith.constant 0 : index
    %31 = vector.load %arg4[%30, %c0_19] : memref<16x1xf32, #tpu.memory_space<vmem>>, vector<8x1xf32>
    %32 = arith.index_cast %1 : i32 to index
    %c0_20 = arith.constant 0 : index
    %33 = vector.load %arg5[%32, %c0_20] : memref<16x1xf32, #tpu.memory_space<vmem>>, vector<8x1xf32>
    %34 = vector.shape_cast %31 : vector<8x1xf32> to vector<1x8x1xf32>
    %cst_21 = arith.constant 9.99999974E-6 : f32
    %35 = vector.broadcast %cst_21 : f32 to vector<1x8x1xf32>
    %36 = arith.addf %29, %35 : vector<1x8x1xf32>
    %37 = math.rsqrt %36 : vector<1x8x1xf32>
    %38 = arith.mulf %34, %37 : vector<1x8x1xf32>
    %39 = vector.shape_cast %33 : vector<8x1xf32> to vector<1x8x1xf32>
    %40 = arith.mulf %22, %38 : vector<1x8x1xf32>
    %41 = arith.subf %39, %40 : vector<1x8x1xf32>
    %42 = vector.broadcast %38 : vector<1x8x1xf32> to vector<2x8x16xf32>
    %43 = arith.mulf %18, %42 : vector<2x8x16xf32>
    %44 = vector.broadcast %41 : vector<1x8x1xf32> to vector<2x8x16xf32>
    %45 = arith.addf %43, %44 : vector<2x8x16xf32>
    %cst_22 = arith.constant 5.000000e-01 : f32
    %46 = vector.broadcast %cst_22 : f32 to vector<2x8x16xf32>
    %47 = arith.mulf %46, %45 : vector<2x8x16xf32>
    %cst_23 = arith.constant 0.707106769 : f32
    %48 = vector.broadcast %cst_23 : f32 to vector<2x8x16xf32>
    %49 = arith.mulf %45, %48 : vector<2x8x16xf32>
    %cst_24 = arith.constant 0.000000e+00 : f32
    %50 = vector.broadcast %cst_24 : f32 to vector<2x8x16xf32>
    %51 = arith.cmpf oge, %49, %50 : vector<2x8x16xf32>
    %cst_25 = arith.constant 1.000000e+00 : f32
    %cst_26 = arith.constant -1.000000e+00 : f32
    %52 = vector.broadcast %cst_25 : f32 to vector<2x8x16xf32>
    %53 = vector.broadcast %cst_26 : f32 to vector<2x8x16xf32>
    %54 = arith.select %51, %52, %53 : vector<2x8x16xi1>, vector<2x8x16xf32>
    %55 = math.absf %49 : vector<2x8x16xf32>
    %cst_27 = arith.constant 0.327591091 : f32
    %56 = vector.broadcast %cst_27 : f32 to vector<2x8x16xf32>
    %57 = arith.mulf %56, %55 : vector<2x8x16xf32>
    %cst_28 = arith.constant 1.000000e+00 : f32
    %58 = vector.broadcast %cst_28 : f32 to vector<2x8x16xf32>
    %59 = arith.addf %58, %57 : vector<2x8x16xf32>
    %60 = tpu.reciprocal %59 {approx = true} : vector<2x8x16xf32> -> vector<2x8x16xf32>
    %61 = arith.mulf %59, %60 : vector<2x8x16xf32>
    %cst_29 = arith.constant 2.000000e+00 : f32
    %62 = vector.broadcast %cst_29 : f32 to vector<2x8x16xf32>
    %63 = arith.subf %62, %61 : vector<2x8x16xf32>
    %64 = arith.mulf %60, %63 : vector<2x8x16xf32>
    %cst_30 = arith.constant 1.06140542 : f32
    %65 = vector.broadcast %cst_30 : f32 to vector<2x8x16xf32>
    %66 = arith.mulf %65, %64 : vector<2x8x16xf32>
    %cst_31 = arith.constant -1.45315206 : f32
    %67 = vector.broadcast %cst_31 : f32 to vector<2x8x16xf32>
    %68 = arith.addf %66, %67 : vector<2x8x16xf32>
    %69 = arith.mulf %68, %64 : vector<2x8x16xf32>
    %cst_32 = arith.constant 1.42141378 : f32
    %70 = vector.broadcast %cst_32 : f32 to vector<2x8x16xf32>
    %71 = arith.addf %69, %70 : vector<2x8x16xf32>
    %72 = arith.mulf %71, %64 : vector<2x8x16xf32>
    %cst_33 = arith.constant -0.284496725 : f32
    %73 = vector.broadcast %cst_33 : f32 to vector<2x8x16xf32>
    %74 = arith.addf %72, %73 : vector<2x8x16xf32>
    %75 = arith.mulf %74, %64 : vector<2x8x16xf32>
    %cst_34 = arith.constant 0.254829586 : f32
    %76 = vector.broadcast %cst_34 : f32 to vector<2x8x16xf32>
    %77 = arith.addf %75, %76 : vector<2x8x16xf32>
    %78 = arith.mulf %77, %64 : vector<2x8x16xf32>
    %cst_35 = arith.constant 0.000000e+00 : f32
    %79 = vector.broadcast %cst_35 : f32 to vector<2x8x16xf32>
    %80 = arith.subf %79, %55 : vector<2x8x16xf32>
    %81 = arith.mulf %80, %55 : vector<2x8x16xf32>
    %82 = math.exp %81 : vector<2x8x16xf32>
    %83 = arith.mulf %78, %82 : vector<2x8x16xf32>
    %cst_36 = arith.constant 1.000000e+00 : f32
    %84 = vector.broadcast %cst_36 : f32 to vector<2x8x16xf32>
    %85 = arith.subf %84, %83 : vector<2x8x16xf32>
    %86 = arith.mulf %54, %85 : vector<2x8x16xf32>
    %cst_37 = arith.constant 1.000000e+00 : f32
    %87 = vector.broadcast %cst_37 : f32 to vector<2x8x16xf32>
    %88 = arith.addf %87, %86 : vector<2x8x16xf32>
    %89 = arith.mulf %47, %88 : vector<2x8x16xf32>
    %c0_38 = arith.constant 0 : index
    %c0_39 = arith.constant 0 : index
    %c0_40 = arith.constant 0 : index
    %90 = vector.load %arg6[%c0_38, %c0_39, %c0_40] : memref<2x8x16xf32, #tpu.memory_space<vmem>>, vector<2x8x16xf32>
    tpu.vector_store %arg6[%c0_38, %c0_39, %c0_40], %89 {strides = array<i32>} : memref<2x8x16xf32, #tpu.memory_space<vmem>>, vector<2x8x16xf32>,
    return
  }
  func.func @transform_0(%arg0: i32) -> (i32, i32, i32) {
    %c0_i32 = arith.constant 0 : i32
    %c0_i32_0 = arith.constant 0 : i32
    %c0_i32_1 = arith.constant 0 : i32
    %c0_i32_2 = arith.constant 0 : i32
    return %c0_i32, %c0_i32_0, %c0_i32_1 : i32, i32, i32
  }
  func.func @transform_1(%arg0: i32) -> (i32, i32) {
    %c0_i32 = arith.constant 0 : i32
    %c0_i32_0 = arith.constant 0 : i32
    %c0_i32_1 = arith.constant 0 : i32
    return %c0_i32, %c0_i32_0 : i32, i32
  }
  func.func @transform_2(%arg0: i32) -> (i32, i32) {
    %c0_i32 = arith.constant 0 : i32
    %c0_i32_0 = arith.constant 0 : i32
    %c0_i32_1 = arith.constant 0 : i32
    return %c0_i32, %c0_i32_0 : i32, i32
  }
  func.func @transform_3(%arg0: i32) -> (i32, i32) {
    %c0_i32 = arith.constant 0 : i32
    %c0_i32_0 = arith.constant 0 : i32
    %c0_i32_1 = arith.constant 0 : i32
    return %c0_i32, %c0_i32_0 : i32, i32
  }
  func.func @transform_4(%arg0: i32) -> (i32, i32) {
    %c0_i32 = arith.constant 0 : i32
    %c0_i32_0 = arith.constant 0 : i32
    %c0_i32_1 = arith.constant 0 : i32
    return %c0_i32, %c0_i32_0 : i32, i32
  }
  func.func @transform_5(%arg0: i32) -> (i32, i32, i32) {
    %c0_i32 = arith.constant 0 : i32
    %c0_i32_0 = arith.constant 0 : i32
    %c0_i32_1 = arith.constant 0 : i32
    return %c0_i32, %arg0, %c0_i32_0 : i32, i32, i32
  }
}

</mosaic_0001>

<bundles_post_ra>
// kernel: cnn1d_forward.1
= control target key start
LH: loop header
LB: loop body
LE: loop exit
PB: predicated region body
PF: predicated region fallthrough
CT: control target
= control target key end

     0   :  { %10 = vsyncpa [#allocation4], 0  ;;  %s930_s0 = inlined_call_operand.vmem [shape: bf16[2,18,32], index: 0, kind: input, shape index: {}]   ;;  %s931_s1 = inlined_call_operand.vmem [shape: bf16[80,16], index: 1, kind: input, shape index: {}]   ;;  %s932_s2 = inlined_call_operand.vmem [shape: f32[1,16], index: 2, kind: input, shape index: {}]   ;;  %s933_s3 = inlined_call_operand.vmem [shape: f32[16,1], index: 3, kind: input, shape index: {}]   ;;  %s934_s4 = inlined_call_operand.vmem [shape: f32[16,1], index: 4, kind: input, shape index: {}]   ;;  %s935_s5 = inlined_call_operand.hbm [shape: f32[2,16,16], index: 5, kind: output, shape index: {}]  }
   0x1   :  { %12 = vsyncpa [#allocation4 + $0x1], 0  ;;  %s761_s18 = smov 0   ;;  %s763_s19 = smov 0  }
   0x2   :  { %s765_s20 = smov 0   ;;  %s767_s21 = smov 0  }
   0x3 LB: > { %s782_s22 = sadd.s32 4294967295, %s719_s21   ;;  %s551_s23 = sadd.s32 4294967294, %s719_s21   ;;  %s719_s21 = sphi %s767_s21, %s945_s21   ;;  %s715_s20 = sphi %s765_s20, %s944_s20   ;;  %s711_s19 = sphi %s763_s19, %s943_s19   ;;  %s707_s18 = sphi %s761_s18, %s942_s18  }
   0x4   : > { %s786_s24 = sadd.s32 1, %s719_s21   ;;  %s130_s25 = sadd.s32 1, %s715_s20 }
   0x5   : > { %s127_s26 = ssub.s32 %s719_s21, %s786_s24  ;;  %p140_p0 = scmp.ne.s32.totalorder %s715_s20, %s711_s19 }
   0x6   : > { %p128_p1 = scmp.eq.s32.totalorder %s127_s26, 0  ;;  %p141_p2 = scmp.eq.s32.totalorder %s782_s22, 1 }
   0x7   : > { %p146_p3 = scmp.ne.s32.totalorder %s711_s19, %s707_s18  ;;  %p147_p4 = scmp.eq.s32.totalorder %s551_s23, 1 }
   0x8   : > { %s797_s27 = scalar_select %p128_p1, %s715_s20, %s130_s25  }
   0x9   : > { %p799_p5 = por %p141_p2, %p140_p0  ;;  %p803_p6 = por %p147_p4, %p146_p3 }
   0xa   : > { %p553_p7 = scmp.ge.s32.totalorder %s719_s21, 1  ;;  %p180_p8 = scmp.lt.s32.totalorder %s719_s21, 3 }
   0xc   : > { %p181_p9 = pnand %p553_p7, %p180_p8 }
   0xd   : > { %s810_s30 = sshll.u32 (!%p181_p9), %s782_s22, 3  ;;  %vm216_vm0 = vsmask.f32 (!%p181_p9), 3328  ;;  %vm217_vm1 = vsmask.f32 (!%p181_p9), 7440  ;;  %vm260_vm2 = vcmask (!%p181_p9), 1042432  }
   0xe   : > { %184 = sbr.rel (%p181_p9) target bundleno = 888 (0x378), region = 40  ;;  %s205_s6 = sshra.s32 (!%p181_p9), %s810_s30, 3  ;;  %vm261_vm3 = vcmask (!%p181_p9), 1046532   ;;  %v641_v0 = vld [vmem:[%s931_s1] sm:$0xff] (!%p181_p9)   ;;  %v721_v1 = vmov (!%p181_p9), 0.0   ;;  %vm213_vm4 = vcmask (!%p181_p9), 257024   ;;  %vm835_vm6 = vmor (!%p181_p9), %vm216_vm0, %vm217_vm1 }
   0xf   : > { %s556_s9 = sshll.u32 (!%p181_p9), %s205_s6, 2  ;;  %577 = vmatprep.subr.bf16.mxu0 (!%p181_p9), %v721_v1  ;;  %v642_v2 = vld [vmem:[%s931_s1 + $0x8] sm:$0xff] (!%p181_p9)   ;;  %vm824_vm5 = vmor (!%p181_p9), %vm260_vm2, %vm261_vm3  ;;  %v643_v22 = vld [vmem:[%s931_s1 + $0x10] sm:$0xff] (!%p181_p9)   ;;  %s722_s17 = smov (!%p181_p9), 64   ;;  %vm723_vm7 = vmmov (!%p181_p9), 0   ;;  %vm253_vm8 = vcmask (!%p181_p9), 519424  }
  0x10   : > { %s208_s12 = scalar_lea.vmem (!%p181_p9), %s930_s0, %s556_s9  ;;  %578 = vmatpush3.bf16.msra.mxu0 (!%p181_p9), %v641_v0  ;;  %v644_v31 = vld [vmem:[%s931_s1 + $0x18] sm:$0xff] (!%p181_p9)   ;;  %587 = vmatprep.mubr.msk.bf16.mxu0 (!%p181_p9), %vm723_vm7, %v721_v1  ;;  %s724_s26 = smov (!%p181_p9), 32   ;;  %v645_v35 = vld [vmem:[%s931_s1 + $0x20] sm:$0xff] (!%p181_p9)   ;;  %vm277_vm9 = vcmask (!%p181_p9), 650752   ;;  %vm327_vm10 = vcmask (!%p181_p9), 654336   ;;  %vm381_vm11 = vcmask (!%p181_p9), 130048  }
  0x11   : > { %v209_v3 = vld [vmem:[%s208_s12] sm:$0xf] (!%p181_p9)  ;;  %v210_v4 = vld [vmem:[%s208_s12 + $0x4] sm:$0x1] (!%p181_p9)  ;;  %v211_v5 = vld [vmem:[%s208_s12 + $0xc] sm:$0xf] (!%p181_p9)  ;;  %579 = vmatprep.subr.bf16.mxu0 (!%p181_p9), %v721_v1  ;;  %s401_s15 = scalar_lea.vmem (!%p181_p9), %s934_s4, %s810_s30 }
  0x12   : > { %v220_v6 = vshrl.u32 (!%p181_p9), %v209_v3, 16  ;;  %v223_v7 = vshll.u32 (!%p181_p9), %v209_v3, 16  ;;  %v229_v8 = vshll.u32 (!%p181_p9), %v210_v4, 16  ;;  %v557_v10 = vrot.slane (!%p181_p9), %v209_v3, 9  ;;  %v212_v11 = vld [vmem:[%s208_s12 + $0x10] sm:$0x1] (!%p181_p9)  ;;  %s399_s12 = scalar_lea.vmem (!%p181_p9), %s933_s3, %s810_s30 }
  0x13   : > { %214 = vst.msk [vmem:[#allocation2] sm:$0xf] (!%p181_p9), %vm213_vm4, %v209_v3  ;;  %215 = vst.msk [vmem:[#allocation2 + $0x4] sm:$0xf] (!%p181_p9), %vm213_vm4, %v211_v5  ;;  %v265_v12 = vrot.slane (!%p181_p9), %v210_v4, 5  ;;  %v234_v13 = vshrl.u32 (!%p181_p9), %v211_v5, 16 }
  0x14   : > { %v237_v14 = vshll.u32 (!%p181_p9), %v211_v5, 16  ;;  %v222_v15 = vrot.slane (!%p181_p9), %v220_v6, 4  ;;  %v225_v16 = vrot.slane (!%p181_p9), %v223_v7, 5  ;;  %v243_v17 = vshll.u32 (!%p181_p9), %v212_v11, 16  ;;  %580 = vmatpush3.bf16.msra.mxu0 (!%p181_p9), %v642_v2  ;;  %v566_v41 = vld [vmem:[%s932_s2] ss:$0 sm:$0xff] (!%p181_p9) }
  0x15   : > { %v558_v18 = vrot.slane %v211_v5, 9  ;;  %v266_v19 = vsel %vm824_vm5, %v557_v10, %v265_v12  ;;  %v236_v20 = vrot.slane %v234_v13, 4  ;;  %581 = vmatprep.subr.bf16.mxu0 %v721_v1  ;;  %v231_v24 = vrot.slane %v229_v8, 5  ;;  %v400_v0 = vld [vmem:[%s399_s12] sm:$0xff]  ;;  %s200_s30 = sand.u32 1, %s711_s19   ;;  %s568_s25 = sshll.u32 %s782_s22, 7 }
  0x16   : > { %v239_v21 = vrot.slane %v237_v14, 5  ;;  %v226_v23 = vor.u32 %v225_v16, %v222_v15  ;;  %271 = vrot.lane.b32.xlu1 %v266_v19, %s722_s17  ;;  %v269_v25 = vrot.slane %v212_v11, 5  ;;  %v245_v29 = vrot.slane %v243_v17, 5  ;;  %v402_v3 = vld [vmem:[%s401_s15] sm:$0xff]  ;;  %s554_s16 = sshll.u32 %s200_s30, 4  ;;  %s883_s7 = scalar_lea.hbm %s935_s5, %s568_s25 }
  0x17   : > { %v725_v60 = vmov 0   ;;  %s889_s22 = scalar_lea.sflag [#allocation4], %s200_s30  ;;  %s727_s9 = smov [#allocation3]  }
  0x18   : > { %v240_v27 = vor.u32 %v239_v21, %v236_v20  ;;  %v227_v28 = vrot.slane %v226_v23, 4  ;;  %v270_v30 = vsel %vm824_vm5, %v558_v18, %v269_v25  ;;  %582 = vmatpush3.bf16.msra.mxu0 %v643_v22  ;;  %639 = vset.pattern.permute.xlu0 %v725_v60  ;;  %s661_s10 = sshll.u32 %s727_s9, 4  ;;  %s662_s10 = int_to_ptr.vmem [resolvable:$false] %s661_s10 }
  0x19   : > { %583 = vmatprep.subr.bf16.mxu0 %v721_v1  ;;  %640 = vset.pattern.permute.xlu1 %v725_v60  ;;  %s663_s11 = scalar_lea.vmem %s662_s10, 512 }
  0x1a   : > { %v241_v32 = vrot.slane %v240_v27, 4  ;;  %v232_v33 = vsel %vm835_vm6, %v227_v28, %v231_v24  ;;  %273 = vrot.lane.b32.xlu1 %v270_v30, %s722_s17  ;;  %s202_s17 = scalar_lea.vmem [#allocation3], %s554_s16 }
  0x1b   : > { %247 = vrot.lane.b32.xlu0 %v232_v33, %s724_s26  ;;  %s495_s23 = sshll.u32 %s202_s17, 4  ;;  %s878_s23 = int_to_ptr.vmem [resolvable:$true] %s495_s23 }
  0x1c   : > { %v246_v34 = vsel %vm835_vm6, %v241_v32, %v245_v29  ;;  %584 = vmatpush3.bf16.msra.mxu0 %v644_v31  ;;  %s657_s8 = scalar_lea.vmem %s878_s23, 256  ;;  %p664_p13 = scmp.lt.s32.totalorder %s878_s23, %s662_s10 }
  0x1d   : > { %585 = vmatprep.subr.bf16.mxu0 %v721_v1  ;;  %p658_p10 = scmp.ne.s32.totalorder %s878_s23, %s657_s8  ;;  %p665_p0 = scmp.lt.s32.totalorder %s663_s11, %s657_s8 }
  0x1f   : > { %249 = vrot.lane.b32.xlu0 %v246_v34, %s724_s26  ;;  %p659_p11 = pnand %p658_p10, %p799_p5  ;;  %p666_p1 = por %p665_p0, %p664_p13 }
  0x20   : > { %586 = vmatpush3.bf16.msra.mxu0 %v645_v35 }
  0x21   : > { %p660_p12 = pneg %p659_p11 }
  0x23   : > { %p667_p2 = pnand %p666_p1, %p660_p12 }
  0x88   : > { %v272_v36 = vpop.permute.xlu1 %271 }
  0x8c   : > { %v274_v38 = vpop.permute.xlu1 %273 }
  0x8d   : > { %v248_v37 = vpop.permute.xlu0 %247 }
  0x8e   : > { %254 = vst.msk [vmem:[#allocation2] sm:$0xf] %vm253_vm8, %v248_v37 }
  0x8f   : > { %278 = vst.msk [vmem:[#allocation2] sm:$0xf] %vm277_vm9, %v272_v36 }
  0x91   : > { %v250_v39 = vpop.permute.xlu0 %249 }
  0x92   : > { %255 = vst.msk [vmem:[#allocation2 + $0x4] sm:$0xf] %vm253_vm8, %v250_v39 }
  0x93   : > { %279 = vst.msk [vmem:[#allocation2 + $0x4] sm:$0xf] %vm277_vm9, %v274_v38 }
  0x9a   : > { %v646_v40 = vld [vmem:[#allocation2] sm:$0xff]  }
  0x9b   : > { %588 = vmatmul.mubr.msk.bf16.vlgmr.msra.gmra.mrb[0].mxu0 %vm327_vm10, %v646_v40 }
 0x16e   : > { %v365_v42 = vpop.f32.mrb[0].mxu0 }
 0x16f   : > { %v379_v43 = vadd.f32 %v566_v41, %v365_v42  ;;  %v589_v44 = vpop.f32.mrb[1].mxu0 }
 0x170   : > { %v368_v45 = vpop.f32.mrb[2].mxu0 }
 0x171   : > { %v380_v46 = vadd.f32 %v566_v41, %v368_v45  ;;  %v590_v47 = vpop.f32.mrb[3].mxu0  ;;  %v382_v48 = vsel %vm381_vm11, %v379_v43, 0.0 }
 0x173   : > { %v383_v49 = vsel %vm381_vm11, %v380_v46, 0.0 }
 0x174   : > { %v384_v50 = vadd.f32 %v383_v49, %v382_v48 }
 0x176   : > { %385 = vadd.xlane.f32.xlu0 %v384_v50 }
 0x203   : > { %v386_v51 = vpop.xlane.xlu0 %385 }
 0x204   : > { %v388_v52 = vmul.f32 0.03125, %v386_v51 }
 0x206   : > { %v389_v53 = vsub.f32 %v379_v43, %v388_v52  ;;  %v390_v54 = vsub.f32 %v380_v46, %v388_v52 }
 0x208   : > { %v391_v55 = vmul.f32 %v389_v53, %v389_v53  ;;  %v392_v56 = vmul.f32 %v390_v54, %v390_v54 }
 0x20a   : > { %v393_v57 = vsel %vm381_vm11, %v391_v55, 0.0  ;;  %v394_v58 = vsel %vm381_vm11, %v392_v56, 0.0 }
 0x20b   : > { %v395_v59 = vadd.f32 %v394_v58, %v393_v57  ;;  %v726_v57 = vmov -1.0  }
 0x20d   : > { %396 = vadd.xlane.f32.xlu1 %v395_v59 }
 0x29a   : > { %v397_v61 = vpop.xlane.xlu1 %396 }
 0x29b   : > { %v398_v62 = vmul.f32 0.03125, %v397_v61 }
 0x29d   : > { %v403_v63 = vadd.f32 1e-05, %v398_v62 }
 0x29f   : > { %647 = vrsqrt.f32 %v403_v63 }
 0x2a9   : > { %v648_v1 = vpop.eup %647 }
 0x2aa   : > { %v405_v2 = vmul.f32 %v648_v1, %v400_v0 }
 0x2ac   : > { %410 = vperm.xlu0 %639, %v405_v2   ;;  %v406_v4 = vmul.f32 %v405_v2, %v388_v52 }
 0x2ae   : > { %v407_v5 = vsub.f32 %v402_v3, %v406_v4 }
 0x2b0   : > { %417 = vperm.xlu1 %640, %v407_v5  }
 0x32b   : > { %v411_v6 = vpop.permute.xlu0 %410 }
 0x32c   : > { %v413_v7 = vmul.f32 %v411_v6, %v379_v43  ;;  %v414_v8 = vmul.f32 %v411_v6, %v380_v46 }
 0x32f   : > { %v418_v9 = vpop.permute.xlu1 %417 }
 0x330   : > { %v866_v10 = vadd.f32 %v418_v9, %v413_v7  ;;  %v868_v11 = vadd.f32 %v418_v9, %v414_v8 }
 0x332   : > { %v424_v12 = vmul.f32 0.70710677, %v866_v10  ;;  %v425_v13 = vmul.f32 0.70710677, %v868_v11  ;;  %v422_v63 = vmul.f32 0.5, %v866_v10  ;;  %v423_v1 = vmul.f32 0.5, %v868_v11 }
 0x334   : > { %v430_v14 = vand.u32 2147483647, %v424_v12  ;;  %v431_v15 = vand.u32 2147483647, %v425_v13  ;;  %vm426_vm12 = vcmp.ge.f32.partialorder %v424_v12, 0.0  ;;  %vm427_vm13 = vcmp.ge.f32.partialorder %v425_v13, 0.0 }
 0x335   : > { %v428_v58 = vsel %vm426_vm12, 1.0, %v726_v57  ;;  %v429_v60 = vsel %vm427_vm13, 1.0, %v726_v57 }
 0x336   : > { %v432_v16 = vmul.f32 0.3275911, %v430_v14  ;;  %v433_v17 = vmul.f32 0.3275911, %v431_v15  ;;  %v462_v24 = vsub.f32 0.0, %v430_v14  ;;  %v463_v26 = vsub.f32 0.0, %v431_v15 }
 0x338   : > { %v434_v18 = vadd.f32 1.0, %v432_v16  ;;  %v435_v19 = vadd.f32 1.0, %v433_v17  ;;  %v464_v30 = vmul.f32 %v462_v24, %v430_v14  ;;  %v465_v32 = vmul.f32 %v463_v26, %v431_v15 }
 0x33a   : > { %649 = vrcp.f32 %v434_v18  ;;  %v466_v36 = vmul.f32 1.442695, %v464_v30  ;;  %v468_v38 = vmul.f32 1.442695, %v465_v32 }
 0x33b   : > { %651 = vrcp.f32 %v435_v19 }
 0x33c   : > { %653 = vpow2.f32 %v466_v36 }
 0x33d   : > { %655 = vpow2.f32 %v468_v38 }
 0x344   : > { %v650_v20 = vpop.eup %649 }
 0x345   : > { %v652_v21 = vpop.eup %651  ;;  %v438_v22 = vmul.f32 %v650_v20, %v434_v18 }
 0x346   : > { %v439_v23 = vmul.f32 %v652_v21, %v435_v19  ;;  %v654_v51 = vpop.eup %653 }
 0x347   : > { %v440_v25 = vsub.f32 2.0, %v438_v22  ;;  %v656_v53 = vpop.eup %655 }
 0x348   : > { %v441_v27 = vsub.f32 2.0, %v439_v23 }
 0x349   : > { %v442_v28 = vmul.f32 %v650_v20, %v440_v25 }
 0x34a   : > { %v443_v29 = vmul.f32 %v652_v21, %v441_v27 }
 0x34b   : > { %v444_v31 = vmul.f32 1.0614054, %v442_v28 }
 0x34c   : > { %v445_v33 = vmul.f32 1.0614054, %v443_v29 }
 0x34d   : > { %v446_v34 = vadd.f32 -1.4531521, %v444_v31 }
 0x34e   : > { %v447_v35 = vadd.f32 -1.4531521, %v445_v33 }
 0x34f   : > { %v448_v37 = vmul.f32 %v446_v34, %v442_v28 }
 0x350   : > { %v449_v39 = vmul.f32 %v447_v35, %v443_v29 }
 0x351   : > { %v450_v40 = vadd.f32 1.4214138, %v448_v37 }
 0x352   : > { %v451_v41 = vadd.f32 1.4214138, %v449_v39 }
 0x353   : > { %v452_v42 = vmul.f32 %v450_v40, %v442_v28 }
 0x354   : > { %v453_v43 = vmul.f32 %v451_v41, %v443_v29 }
 0x355   : > { %v454_v44 = vadd.f32 -0.28449672, %v452_v42 }
 0x356   : > { %v455_v45 = vadd.f32 -0.28449672, %v453_v43 }
 0x357   : > { %v456_v46 = vmul.f32 %v454_v44, %v442_v28 }
 0x358   : > { %v457_v47 = vmul.f32 %v455_v45, %v443_v29 }
 0x359   : > { %v458_v48 = vadd.f32 0.2548296, %v456_v46 }
 0x35a   : > { %v459_v49 = vadd.f32 0.2548296, %v457_v47 }
 0x35b   : > { %v460_v50 = vmul.f32 %v458_v48, %v442_v28 }
 0x35c   : > { %v461_v52 = vmul.f32 %v459_v49, %v443_v29 }
 0x35d   : > { %v470_v54 = vmul.f32 %v654_v51, %v460_v50 }
 0x35e   : > { %v471_v55 = vmul.f32 %v656_v53, %v461_v52 }
 0x35f   : > { %v472_v56 = vsub.f32 1.0, %v470_v54 }
 0x360   : > { %v473_v59 = vsub.f32 1.0, %v471_v55 }
 0x361   : > { %v474_v61 = vmul.f32 %v472_v56, %v428_v58 }
 0x362   : > { %v475_v62 = vmul.f32 %v473_v59, %v429_v60 }
 0x363   : > { %v476_v0 = vadd.f32 1.0, %v474_v61 }
 0x364   : > { %v477_v2 = vadd.f32 1.0, %v475_v62 }
 0x365   : > { %v478_v3 = vmul.f32 %v476_v0, %v422_v63 }
 0x366   : > { %v479_v4 = vmul.f32 %v477_v2, %v423_v1 }
 0x367   : > { %480 = vst.msk [vmem:[%s202_s17] sm:$0xff] %vm381_vm11, %v478_v3 }
 0x368   : > { %481 = vst.msk [vmem:[%s202_s17 + $0x8] sm:$0xff] %vm381_vm11, %v479_v4 }
 0x369   : > { %670 = shalt.err (!%p667_p2)
}
 0x36a   : > { %s671_s12 = scalar_lea.hbm %s883_s7, 256  ;;  %s675_s15 = scalar_lea.hbm %s935_s5, 512 }
 0x36b   : > { %p672_p3 = scmp.ne.s32.totalorder %s883_s7, %s671_s12  ;;  %p676_p8 = scmp.lt.u32.totalorder %s883_s7, %s935_s5 }
 0x36c   : > { %p677_p9 = scmp.lt.u32.totalorder %s675_s15, %s671_s12  ;;  %p679_p11 = scmp.lt.u32.totalorder %s671_s12, %s883_s7 }
 0x36d   : > { %p673_p4 = pnand %p672_p3, %p799_p5 }
 0x36e   : > { %p678_p10 = por %p677_p9, %p676_p8 }
 0x36f   : > { %p674_p7 = pneg %p673_p4 }
 0x370   : > { %p680_p12 = por %p679_p11, %p678_p10 }
 0x372   : > { %p681_p13 = pnand %p680_p12, %p674_p7 }
 0x374   : > { %684 = shalt.err (!%p681_p13)
}
 0x375   : > { %s728_s17 = smov 128   ;;  %s729_s25 = smov 256  }
 0x376   : > { %s730_s26 = smov 8  }
 0x377   : > { %591 = dma.vmem_to_hbm [thread:$0]  (%p799_p5), %s878_s23, 256, %s883_s7, %s889_s22, %s728_s17, %s729_s25, %s730_s26  }
 0x378 PF: > { %p597_p0 = scmp.ge.s32.totalorder %s719_s21, 2  ;;  %s510_s6 = sand.u32 1, %s707_s18  }
 0x379   : > { %s511_s8 = scalar_lea.sflag [#allocation4], %s510_s6 }
 0x37a   : > { %p594_p1 = pnand %p597_p0, %p803_p6 }
 0x37c   : > { %702 = dma.done.wait (!%p594_p1), %s511_s8, 256  }
 0x37d   : > { %704 = vsyncadd (!%p594_p1), %s511_s8, 4294967040  ;;  %p15_p2 = scmp.ge.s32.totalorder %s786_s24, 4   ;;  %s942_s18 = smov %s711_s19 }
 0x37e   : > { %s943_s19 = smov %s715_s20  ;;  %s944_s20 = smov %s797_s27 }
 0x37f   : > { %s945_s21 = smov %s786_s24  ;;  %17 = sbr.rel (!%p15_p2) target bundleno = 3 (0x3), region = 75 }
 0x386   :  { %516 = vsyncpa [#allocation4], 1 }
 0x387   :  { %518 = vsyncpa [#allocation4 + $0x1], 1 }

// kernel: cnn1d_forward.1
= control target key start
LH: loop header
LB: loop body
LE: loop exit
PB: predicated region body
PF: predicated region fallthrough
CT: control target
= control target key end

     0   :  { %10 = vsyncpa [#allocation4], 0  ;;  %s930_s0 = inlined_call_operand.vmem [shape: bf16[2,18,32], index: 0, kind: input, shape index: {}]   ;;  %s931_s1 = inlined_call_operand.vmem [shape: bf16[80,16], index: 1, kind: input, shape index: {}]   ;;  %s932_s2 = inlined_call_operand.vmem [shape: f32[1,16], index: 2, kind: input, shape index: {}]   ;;  %s933_s3 = inlined_call_operand.vmem [shape: f32[16,1], index: 3, kind: input, shape index: {}]   ;;  %s934_s4 = inlined_call_operand.vmem [shape: f32[16,1], index: 4, kind: input, shape index: {}]   ;;  %s935_s5 = inlined_call_operand.hbm [shape: f32[2,16,16], index: 5, kind: output, shape index: {}]  }
   0x1   :  { %12 = vsyncpa [#allocation4 + $0x1], 0  ;;  %s761_s18 = smov 0   ;;  %s763_s19 = smov 0  }
   0x2   :  { %s765_s20 = smov 0   ;;  %s767_s21 = smov 0  }
   0x3 LB: > { %s782_s22 = sadd.s32 4294967295, %s719_s21   ;;  %s551_s23 = sadd.s32 4294967294, %s719_s21   ;;  %s719_s21 = sphi %s767_s21, %s945_s21   ;;  %s715_s20 = sphi %s765_s20, %s944_s20   ;;  %s711_s19 = sphi %s763_s19, %s943_s19   ;;  %s707_s18 = sphi %s761_s18, %s942_s18  }
   0x4   : > { %s786_s24 = sadd.s32 1, %s719_s21   ;;  %s130_s25 = sadd.s32 1, %s715_s20 }
   0x5   : > { %s127_s26 = ssub.s32 %s719_s21, %s786_s24  ;;  %p140_p0 = scmp.ne.s32.totalorder %s715_s20, %s711_s19 }
   0x6   : > { %p128_p1 = scmp.eq.s32.totalorder %s127_s26, 0  ;;  %p141_p2 = scmp.eq.s32.totalorder %s782_s22, 1 }
   0x7   : > { %p146_p3 = scmp.ne.s32.totalorder %s711_s19, %s707_s18  ;;  %p147_p4 = scmp.eq.s32.totalorder %s551_s23, 1 }
   0x8   : > { %s797_s27 = scalar_select %p128_p1, %s715_s20, %s130_s25  }
   0x9   : > { %p799_p5 = por %p141_p2, %p140_p0  ;;  %p803_p6 = por %p147_p4, %p146_p3 }
   0xa   : > { %p553_p7 = scmp.ge.s32.totalorder %s719_s21, 1  ;;  %p180_p8 = scmp.lt.s32.totalorder %s719_s21, 3 }
   0xc   : > { %p181_p9 = pnand %p553_p7, %p180_p8 }
   0xd   : > { %s810_s30 = sshll.u32 (!%p181_p9), %s782_s22, 3  ;;  %vm216_vm0 = vsmask.f32 (!%p181_p9), 3328  ;;  %vm217_vm1 = vsmask.f32 (!%p181_p9), 7440  ;;  %vm260_vm2 = vcmask (!%p181_p9), 1042432  }
   0xe   : > { %184 = sbr.rel (%p181_p9) target bundleno = 888 (0x378), region = 40  ;;  %s205_s6 = sshra.s32 (!%p181_p9), %s810_s30, 3  ;;  %vm261_vm3 = vcmask (!%p181_p9), 1046532   ;;  %v641_v0 = vld [vmem:[%s931_s1] sm:$0xff] (!%p181_p9)   ;;  %v721_v1 = vmov (!%p181_p9), 0.0   ;;  %vm213_vm4 = vcmask (!%p181_p9), 257024   ;;  %vm835_vm6 = vmor (!%p181_p9), %vm216_vm0, %vm217_vm1 }
   0xf   : > { %s556_s9 = sshll.u32 (!%p181_p9), %s205_s6, 2  ;;  %577 = vmatprep.subr.bf16.mxu0 (!%p181_p9), %v721_v1  ;;  %v642_v2 = vld [vmem:[%s931_s1 + $0x8] sm:$0xff] (!%p181_p9)   ;;  %vm824_vm5 = vmor (!%p181_p9), %vm260_vm2, %vm261_vm3  ;;  %v643_v22 = vld [vmem:[%s931_s1 + $0x10] sm:$0xff] (!%p181_p9)   ;;  %s722_s17 = smov (!%p181_p9), 64   ;;  %vm723_vm7 = vmmov (!%p181_p9), 0   ;;  %vm253_vm8 = vcmask (!%p181_p9), 519424  }
  0x10   : > { %s208_s12 = scalar_lea.vmem (!%p181_p9), %s930_s0, %s556_s9  ;;  %578 = vmatpush3.bf16.msra.mxu0 (!%p181_p9), %v641_v0  ;;  %v644_v31 = vld [vmem:[%s931_s1 + $0x18] sm:$0xff] (!%p181_p9)   ;;  %587 = vmatprep.mubr.msk.bf16.mxu0 (!%p181_p9), %vm723_vm7, %v721_v1  ;;  %s724_s26 = smov (!%p181_p9), 32   ;;  %v645_v35 = vld [vmem:[%s931_s1 + $0x20] sm:$0xff] (!%p181_p9)   ;;  %vm277_vm9 = vcmask (!%p181_p9), 650752   ;;  %vm327_vm10 = vcmask (!%p181_p9), 654336   ;;  %vm381_vm11 = vcmask (!%p181_p9), 130048  }
  0x11   : > { %v209_v3 = vld [vmem:[%s208_s12] sm:$0xf] (!%p181_p9)  ;;  %v210_v4 = vld [vmem:[%s208_s12 + $0x4] sm:$0x1] (!%p181_p9)  ;;  %v211_v5 = vld [vmem:[%s208_s12 + $0xc] sm:$0xf] (!%p181_p9)  ;;  %579 = vmatprep.subr.bf16.mxu0 (!%p181_p9), %v721_v1  ;;  %s401_s15 = scalar_lea.vmem (!%p181_p9), %s934_s4, %s810_s30 }
  0x12   : > { %v220_v6 = vshrl.u32 (!%p181_p9), %v209_v3, 16  ;;  %v223_v7 = vshll.u32 (!%p181_p9), %v209_v3, 16  ;;  %v229_v8 = vshll.u32 (!%p181_p9), %v210_v4, 16  ;;  %v557_v10 = vrot.slane (!%p181_p9), %v209_v3, 9  ;;  %v212_v11 = vld [vmem:[%s208_s12 + $0x10] sm:$0x1] (!%p181_p9)  ;;  %s399_s12 = scalar_lea.vmem (!%p181_p9), %s933_s3, %s810_s30 }
  0x13   : > { %214 = vst.msk [vmem:[#allocation2] sm:$0xf] (!%p181_p9), %vm213_vm4, %v209_v3  ;;  %215 = vst.msk [vmem:[#allocation2 + $0x4] sm:$0xf] (!%p181_p9), %vm213_vm4, %v211_v5  ;;  %v265_v12 = vrot.slane (!%p181_p9), %v210_v4, 5  ;;  %v234_v13 = vshrl.u32 (!%p181_p9), %v211_v5, 16 }
  0x14   : > { %v237_v14 = vshll.u32 (!%p181_p9), %v211_v5, 16  ;;  %v222_v15 = vrot.slane (!%p181_p9), %v220_v6, 4  ;;  %v225_v16 = vrot.slane (!%p181_p9), %v223_v7, 5  ;;  %v243_v17 = vshll.u32 (!%p181_p9), %v212_v11, 16  ;;  %580 = vmatpush3.bf16.msra.mxu0 (!%p181_p9), %v642_v2  ;;  %v566_v41 = vld [vmem:[%s932_s2] ss:$0 sm:$0xff] (!%p181_p9) }
  0x15   : > { %v558_v18 = vrot.slane %v211_v5, 9  ;;  %v266_v19 = vsel %vm824_vm5, %v557_v10, %v265_v12  ;;  %v236_v20 = vrot.slane %v234_v13, 4  ;;  %581 = vmatprep.subr.bf16.mxu0 %v721_v1  ;;  %v231_v24 = vrot.slane %v229_v8, 5  ;;  %v400_v0 = vld [vmem:[%s399_s12] sm:$0xff]  ;;  %s200_s30 = sand.u32 1, %s711_s19   ;;  %s568_s25 = sshll.u32 %s782_s22, 7 }
  0x16   : > { %v239_v21 = vrot.slane %v237_v14, 5  ;;  %v226_v23 = vor.u32 %v225_v16, %v222_v15  ;;  %271 = vrot.lane.b32.xlu1 %v266_v19, %s722_s17  ;;  %v269_v25 = vrot.slane %v212_v11, 5  ;;  %v245_v29 = vrot.slane %v243_v17, 5  ;;  %v402_v3 = vld [vmem:[%s401_s15] sm:$0xff]  ;;  %s554_s16 = sshll.u32 %s200_s30, 4  ;;  %s883_s7 = scalar_lea.hbm %s935_s5, %s568_s25 }
  0x17   : > { %v725_v60 = vmov 0   ;;  %s889_s22 = scalar_lea.sflag [#allocation4], %s200_s30  ;;  %s727_s9 = smov [#allocation3]  }
  0x18   : > { %v240_v27 = vor.u32 %v239_v21, %v236_v20  ;;  %v227_v28 = vrot.slane %v226_v23, 4  ;;  %v270_v30 = vsel %vm824_vm5, %v558_v18, %v269_v25  ;;  %582 = vmatpush3.bf16.msra.mxu0 %v643_v22  ;;  %639 = vset.pattern.permute.xlu0 %v725_v60  ;;  %s661_s10 = sshll.u32 %s727_s9, 4  ;;  %s662_s10 = int_to_ptr.vmem [resolvable:$false] %s661_s10 }
  0x19   : > { %583 = vmatprep.subr.bf16.mxu0 %v721_v1  ;;  %640 = vset.pattern.permute.xlu1 %v725_v60  ;;  %s663_s11 = scalar_lea.vmem %s662_s10, 512 }
  0x1a   : > { %v241_v32 = vrot.slane %v240_v27, 4  ;;  %v232_v33 = vsel %vm835_vm6, %v227_v28, %v231_v24  ;;  %273 = vrot.lane.b32.xlu1 %v270_v30, %s722_s17  ;;  %s202_s17 = scalar_lea.vmem [#allocation3], %s554_s16 }
  0x1b   : > { %247 = vrot.lane.b32.xlu0 %v232_v33, %s724_s26  ;;  %s495_s23 = sshll.u32 %s202_s17, 4  ;;  %s878_s23 = int_to_ptr.vmem [resolvable:$true] %s495_s23 }
  0x1c   : > { %v246_v34 = vsel %vm835_vm6, %v241_v32, %v245_v29  ;;  %584 = vmatpush3.bf16.msra.mxu0 %v644_v31  ;;  %s657_s8 = scalar_lea.vmem %s878_s23, 256  ;;  %p664_p13 = scmp.lt.s32.totalorder %s878_s23, %s662_s10 }
  0x1d   : > { %585 = vmatprep.subr.bf16.mxu0 %v721_v1  ;;  %p658_p10 = scmp.ne.s32.totalorder %s878_s23, %s657_s8  ;;  %p665_p0 = scmp.lt.s32.totalorder %s663_s11, %s657_s8 }
  0x1f   : > { %249 = vrot.lane.b32.xlu0 %v246_v34, %s724_s26  ;;  %p659_p11 = pnand %p658_p10, %p799_p5  ;;  %p666_p1 = por %p665_p0, %p664_p13 }
  0x20   : > { %586 = vmatpush3.bf16.msra.mxu0 %v645_v35 }
  0x21   : > { %p660_p12 = pneg %p659_p11 }
  0x23   : > { %p667_p2 = pnand %p666_p1, %p660_p12 }
  0x88   : > { %v272_v36 = vpop.permute.xlu1 %271 }
  0x8c   : > { %v274_v38 = vpop.permute.xlu1 %273 }
  0x8d   : > { %v248_v37 = vpop.permute.xlu0 %247 }
  0x8e   : > { %254 = vst.msk [vmem:[#allocation2] sm:$0xf] %vm253_vm8, %v248_v37 }
  0x8f   : > { %278 = vst.msk [vmem:[#allocation2] sm:$0xf] %vm277_vm9, %v272_v36 }
  0x91   : > { %v250_v39 = vpop.permute.xlu0 %249 }
  0x92   : > { %255 = vst.msk [vmem:[#allocation2 + $0x4] sm:$0xf] %vm253_vm8, %v250_v39 }
  0x93   : > { %279 = vst.msk [vmem:[#allocation2 + $0x4] sm:$0xf] %vm277_vm9, %v274_v38 }
  0x9a   : > { %v646_v40 = vld [vmem:[#allocation2] sm:$0xff]  }
  0x9b   : > { %588 = vmatmul.mubr.msk.bf16.vlgmr.msra.gmra.mrb[0].mxu0 %vm327_vm10, %v646_v40 }
 0x16e   : > { %v365_v42 = vpop.f32.mrb[0].mxu0 }
 0x16f   : > { %v379_v43 = vadd.f32 %v566_v41, %v365_v42  ;;  %v589_v44 = vpop.f32.mrb[1].mxu0 }
 0x170   : > { %v368_v45 = vpop.f32.mrb[2].mxu0 }
 0x171   : > { %v380_v46 = vadd.f32 %v566_v41, %v368_v45  ;;  %v590_v47 = vpop.f32.mrb[3].mxu0  ;;  %v382_v48 = vsel %vm381_vm11, %v379_v43, 0.0 }
 0x173   : > { %v383_v49 = vsel %vm381_vm11, %v380_v46, 0.0 }
 0x174   : > { %v384_v50 = vadd.f32 %v383_v49, %v382_v48 }
 0x176   : > { %385 = vadd.xlane.f32.xlu0 %v384_v50 }
 0x203   : > { %v386_v51 = vpop.xlane.xlu0 %385 }
 0x204   : > { %v388_v52 = vmul.f32 0.03125, %v386_v51 }
 0x206   : > { %v389_v53 = vsub.f32 %v379_v43, %v388_v52  ;;  %v390_v54 = vsub.f32 %v380_v46, %v388_v52 }
 0x208   : > { %v391_v55 = vmul.f32 %v389_v53, %v389_v53  ;;  %v392_v56 = vmul.f32 %v390_v54, %v390_v54 }
 0x20a   : > { %v393_v57 = vsel %vm381_vm11, %v391_v55, 0.0  ;;  %v394_v58 = vsel %vm381_vm11, %v392_v56, 0.0 }
 0x20b   : > { %v395_v59 = vadd.f32 %v394_v58, %v393_v57  ;;  %v726_v57 = vmov -1.0  }
 0x20d   : > { %396 = vadd.xlane.f32.xlu1 %v395_v59 }
 0x29a   : > { %v397_v61 = vpop.xlane.xlu1 %396 }
 0x29b   : > { %v398_v62 = vmul.f32 0.03125, %v397_v61 }
 0x29d   : > { %v403_v63 = vadd.f32 1e-05, %v398_v62 }
 0x29f   : > { %647 = vrsqrt.f32 %v403_v63 }
 0x2a9   : > { %v648_v1 = vpop.eup %647 }
 0x2aa   : > { %v405_v2 = vmul.f32 %v648_v1, %v400_v0 }
 0x2ac   : > { %410 = vperm.xlu0 %639, %v405_v2   ;;  %v406_v4 = vmul.f32 %v405_v2, %v388_v52 }
 0x2ae   : > { %v407_v5 = vsub.f32 %v402_v3, %v406_v4 }
 0x2b0   : > { %417 = vperm.xlu1 %640, %v407_v5  }
 0x32b   : > { %v411_v6 = vpop.permute.xlu0 %410 }
 0x32c   : > { %v413_v7 = vmul.f32 %v411_v6, %v379_v43  ;;  %v414_v8 = vmul.f32 %v411_v6, %v380_v46 }
 0x32f   : > { %v418_v9 = vpop.permute.xlu1 %417 }
 0x330   : > { %v866_v10 = vadd.f32 %v418_v9, %v413_v7  ;;  %v868_v11 = vadd.f32 %v418_v9, %v414_v8 }
 0x332   : > { %v424_v12 = vmul.f32 0.70710677, %v866_v10  ;;  %v425_v13 = vmul.f32 0.70710677, %v868_v11  ;;  %v422_v63 = vmul.f32 0.5, %v866_v10  ;;  %v423_v1 = vmul.f32 0.5, %v868_v11 }
 0x334   : > { %v430_v14 = vand.u32 2147483647, %v424_v12  ;;  %v431_v15 = vand.u32 2147483647, %v425_v13  ;;  %vm426_vm12 = vcmp.ge.f32.partialorder %v424_v12, 0.0  ;;  %vm427_vm13 = vcmp.ge.f32.partialorder %v425_v13, 0.0 }
 0x335   : > { %v428_v58 = vsel %vm426_vm12, 1.0, %v726_v57  ;;  %v429_v60 = vsel %vm427_vm13, 1.0, %v726_v57 }
 0x336   : > { %v432_v16 = vmul.f32 0.3275911, %v430_v14  ;;  %v433_v17 = vmul.f32 0.3275911, %v431_v15  ;;  %v462_v24 = vsub.f32 0.0, %v430_v14  ;;  %v463_v26 = vsub.f32 0.0, %v431_v15 }
 0x338   : > { %v434_v18 = vadd.f32 1.0, %v432_v16  ;;  %v435_v19 = vadd.f32 1.0, %v433_v17  ;;  %v464_v30 = vmul.f32 %v462_v24, %v430_v14  ;;  %v465_v32 = vmul.f32 %v463_v26, %v431_v15 }
 0x33a   : > { %649 = vrcp.f32 %v434_v18  ;;  %v466_v36 = vmul.f32 1.442695, %v464_v30  ;;  %v468_v38 = vmul.f32 1.442695, %v465_v32 }
 0x33b   : > { %651 = vrcp.f32 %v435_v19 }
 0x33c   : > { %653 = vpow2.f32 %v466_v36 }
 0x33d   : > { %655 = vpow2.f32 %v468_v38 }
 0x344   : > { %v650_v20 = vpop.eup %649 }
 0x345   : > { %v652_v21 = vpop.eup %651  ;;  %v438_v22 = vmul.f32 %v650_v20, %v434_v18 }
 0x346   : > { %v439_v23 = vmul.f32 %v652_v21, %v435_v19  ;;  %v654_v51 = vpop.eup %653 }
 0x347   : > { %v440_v25 = vsub.f32 2.0, %v438_v22  ;;  %v656_v53 = vpop.eup %655 }
 0x348   : > { %v441_v27 = vsub.f32 2.0, %v439_v23 }
 0x349   : > { %v442_v28 = vmul.f32 %v650_v20, %v440_v25 }
 0x34a   : > { %v443_v29 = vmul.f32 %v652_v21, %v441_v27 }
 0x34b   : > { %v444_v31 = vmul.f32 1.0614054, %v442_v28 }
 0x34c   : > { %v445_v33 = vmul.f32 1.0614054, %v443_v29 }
 0x34d   : > { %v446_v34 = vadd.f32 -1.4531521, %v444_v31 }
 0x34e   : > { %v447_v35 = vadd.f32 -1.4531521, %v445_v33 }
 0x34f   : > { %v448_v37 = vmul.f32 %v446_v34, %v442_v28 }
 0x350   : > { %v449_v39 = vmul.f32 %v447_v35, %v443_v29 }
 0x351   : > { %v450_v40 = vadd.f32 1.4214138, %v448_v37 }
 0x352   : > { %v451_v41 = vadd.f32 1.4214138, %v449_v39 }
 0x353   : > { %v452_v42 = vmul.f32 %v450_v40, %v442_v28 }
 0x354   : > { %v453_v43 = vmul.f32 %v451_v41, %v443_v29 }
 0x355   : > { %v454_v44 = vadd.f32 -0.28449672, %v452_v42 }
 0x356   : > { %v455_v45 = vadd.f32 -0.28449672, %v453_v43 }
 0x357   : > { %v456_v46 = vmul.f32 %v454_v44, %v442_v28 }
 0x358   : > { %v457_v47 = vmul.f32 %v455_v45, %v443_v29 }
 0x359   : > { %v458_v48 = vadd.f32 0.2548296, %v456_v46 }
 0x35a   : > { %v459_v49 = vadd.f32 0.2548296, %v457_v47 }
 0x35b   : > { %v460_v50 = vmul.f32 %v458_v48, %v442_v28 }
 0x35c   : > { %v461_v52 = vmul.f32 %v459_v49, %v443_v29 }
 0x35d   : > { %v470_v54 = vmul.f32 %v654_v51, %v460_v50 }
 0x35e   : > { %v471_v55 = vmul.f32 %v656_v53, %v461_v52 }
 0x35f   : > { %v472_v56 = vsub.f32 1.0, %v470_v54 }
 0x360   : > { %v473_v59 = vsub.f32 1.0, %v471_v55 }
 0x361   : > { %v474_v61 = vmul.f32 %v472_v56, %v428_v58 }
 0x362   : > { %v475_v62 = vmul.f32 %v473_v59, %v429_v60 }
 0x363   : > { %v476_v0 = vadd.f32 1.0, %v474_v61 }
 0x364   : > { %v477_v2 = vadd.f32 1.0, %v475_v62 }
 0x365   : > { %v478_v3 = vmul.f32 %v476_v0, %v422_v63 }
 0x366   : > { %v479_v4 = vmul.f32 %v477_v2, %v423_v1 }
 0x367   : > { %480 = vst.msk [vmem:[%s202_s17] sm:$0xff] %vm381_vm11, %v478_v3 }
 0x368   : > { %481 = vst.msk [vmem:[%s202_s17 + $0x8] sm:$0xff] %vm381_vm11, %v479_v4 }
 0x369   : > { %670 = shalt.err (!%p667_p2)
}
 0x36a   : > { %s671_s12 = scalar_lea.hbm %s883_s7, 256  ;;  %s675_s15 = scalar_lea.hbm %s935_s5, 512 }
 0x36b   : > { %p672_p3 = scmp.ne.s32.totalorder %s883_s7, %s671_s12  ;;  %p676_p8 = scmp.lt.u32.totalorder %s883_s7, %s935_s5 }
 0x36c   : > { %p677_p9 = scmp.lt.u32.totalorder %s675_s15, %s671_s12  ;;  %p679_p11 = scmp.lt.u32.totalorder %s671_s12, %s883_s7 }
 0x36d   : > { %p673_p4 = pnand %p672_p3, %p799_p5 }
 0x36e   : > { %p678_p10 = por %p677_p9, %p676_p8 }
 0x36f   : > { %p674_p7 = pneg %p673_p4 }
 0x370   : > { %p680_p12 = por %p679_p11, %p678_p10 }
 0x372   : > { %p681_p13 = pnand %p680_p12, %p674_p7 }
 0x374   : > { %684 = shalt.err (!%p681_p13)
}
 0x375   : > { %s728_s17 = smov 128   ;;  %s729_s25 = smov 256  }
 0x376   : > { %s730_s26 = smov 8  }
 0x377   : > { %591 = dma.vmem_to_hbm [thread:$0]  (%p799_p5), %s878_s23, 256, %s883_s7, %s889_s22, %s728_s17, %s729_s25, %s730_s26  }
 0x378 PF: > { %p597_p0 = scmp.ge.s32.totalorder %s719_s21, 2  ;;  %s510_s6 = sand.u32 1, %s707_s18  }
 0x379   : > { %s511_s8 = scalar_lea.sflag [#allocation4], %s510_s6 }
 0x37a   : > { %p594_p1 = pnand %p597_p0, %p803_p6 }
 0x37c   : > { %702 = dma.done.wait (!%p594_p1), %s511_s8, 256  }
 0x37d   : > { %704 = vsyncadd (!%p594_p1), %s511_s8, 4294967040  ;;  %p15_p2 = scmp.ge.s32.totalorder %s786_s24, 4   ;;  %s942_s18 = smov %s711_s19 }
 0x37e   : > { %s943_s19 = smov %s715_s20  ;;  %s944_s20 = smov %s797_s27 }
 0x37f   : > { %s945_s21 = smov %s786_s24  ;;  %17 = sbr.rel (!%p15_p2) target bundleno = 3 (0x3), region = 75 }
 0x386   :  { %516 = vsyncpa [#allocation4], 1 }
 0x387   :  { %518 = vsyncpa [#allocation4 + $0x1], 1 }

</bundles_post_ra>
